<compile_context>
chip_gen: v6e
topology: v6e:2x2x1
jax: 0.10.0
libtpu: 0.0.40
codegen_flags: <defaults>
</compile_context>

<pallas_src>
import jax
import jax.numpy as jnp
from jax.experimental import pallas as pl
from jax.experimental.pallas import tpu as pltpu

VOCAB = 128          # stand-in for len(diction)
H1 = 16
H2 = 32
NUM_CLASSES = 2
DEFAULT_BATCH_TILE = 512


def _round_up(n, m):
    return ((n + m - 1) // m) * m


def _mlp_softmax_kernel(x_ref, w1_ref, b1_ref, w2_ref, b2_ref, w3_ref, b3_ref, o_ref):
    # Fused: Linear -> ReLU -> Linear -> ReLU -> Linear -> Softmax(dim=1)
    x = x_ref[...]                                                        # (bt, V) f32
    h1 = jnp.dot(x, w1_ref[...], preferred_element_type=jnp.float32) + b1_ref[...]
    h1 = jnp.maximum(h1, 0.0)                                             # (bt, 16)
    h2 = jnp.dot(h1, w2_ref[...], preferred_element_type=jnp.float32) + b2_ref[...]
    h2 = jnp.maximum(h2, 0.0)                                             # (bt, 32)
    logits = jnp.dot(h2, w3_ref[...], preferred_element_type=jnp.float32) + b3_ref[...]

    # 2-class softmax via sigmoid: p1 = 1 / (1 + exp(l0 - l1)), p0 = 1 - p1.
    d = logits[:, 1:2] - logits[:, 0:1]                                   # (bt, 1)
    p1 = pl.reciprocal(1.0 + jnp.exp(-d), approx=True)                    # EUP
    p0 = 1.0 - p1

    o_ref[...] = jnp.concatenate([p0, p1], axis=1).astype(o_ref.dtype)    # (bt, 2)


def mlp_forward(x, params, *, batch_tile=DEFAULT_BATCH_TILE):
    w1, b1, w2, b2, w3, b3 = params
    B, V = x.shape
    assert V == w1.shape[0]

    # TPU-friendly batch tile: multiple of 8 sublanes; partial last block is
    # handled by Pallas (OOB reads are unspecified, OOB writes are dropped,
    # and the network is purely row-wise so garbage rows never mix in).
    bt = min(batch_tile, _round_up(B, 8))
    bt = max(8, (bt // 8) * 8)
    grid = (pl.cdiv(B, bt),)

    def batch_map(i):
        return (i, 0)

    def full_map(i):
        return (0, 0)

    return pl.pallas_call(
        _mlp_softmax_kernel,
        out_shape=jax.ShapeDtypeStruct((B, NUM_CLASSES), jnp.float32),
        grid_spec=pltpu.PrefetchScalarGridSpec(
            num_scalar_prefetch=0,
            grid=grid,
            in_specs=[
                pl.BlockSpec((bt, V), batch_map),             # x tile
                pl.BlockSpec((V, H1), full_map),              # W1
                pl.BlockSpec((1, H1), full_map),              # b1
                pl.BlockSpec((H1, H2), full_map),             # W2
                pl.BlockSpec((1, H2), full_map),              # b2
                pl.BlockSpec((H2, NUM_CLASSES), full_map),    # W3
                pl.BlockSpec((1, NUM_CLASSES), full_map),     # b3
            ],
            out_specs=pl.BlockSpec((bt, NUM_CLASSES), batch_map),
        ),
        compiler_params=pltpu.CompilerParams(
            dimension_semantics=("parallel",),
        ),
    )(x, w1, b1, w2, b2, w3, b3)


def init_params(key):
    """Deterministic init mimicking PyTorch's uniform(-1/sqrt(fan_in), 1/sqrt(fan_in))."""
    def linear(key, fan_in, fan_out):
        kw, kb = jax.random.split(key)
        bound = 1.0 / jnp.sqrt(fan_in)
        w = jax.random.uniform(kw, (fan_in, fan_out), jnp.float32, -bound, bound)
        b = jax.random.uniform(kb, (1, fan_out), jnp.float32, -bound, bound)
        return w, b

    k1, k2, k3 = jax.random.split(key, 3)
    w1, b1 = linear(k1, VOCAB, H1)
    w2, b2 = linear(k2, H1, H2)
    w3, b3 = linear(k3, H2, NUM_CLASSES)
    return (w1, b1, w2, b2, w3, b3)


def reference_forward(x, params):
    w1, b1, w2, b2, w3, b3 = params
    h1 = jnp.maximum(x @ w1 + b1, 0.0)
    h2 = jnp.maximum(h1 @ w2 + b2, 0.0)
    logits = h2 @ w3 + b3
    return jax.nn.softmax(logits, axis=1)


if __name__ == "__main__":
    key = jax.random.PRNGKey(0)
    kx, kp = jax.random.split(key)

    # Batch deliberately not a multiple of the tile to exercise the
    # partial-last-block path; tile of 64 gives a 4-step "parallel" grid.
    batch = 200
    x = jax.random.uniform(kx, (batch, VOCAB), jnp.float32, 0.0, 1.0)
    x = x / jnp.sum(x, axis=1, keepdims=True)   # bag-of-words style normalized counts

    params = init_params(kp)
    ref = reference_forward(x, params)

    # Multi-step grid with a partial last block.
    out = jax.block_until_ready(mlp_forward(x, params, batch_tile=64))
    assert out.shape == (batch, NUM_CLASSES)
    assert jnp.allclose(out, ref, atol=5e-3)                 # approx reciprocal
    assert jnp.allclose(jnp.sum(out, axis=1), 1.0, atol=1e-3)

    # Default (single-step) tile path.
    out2 = jax.block_until_ready(mlp_forward(x, params))
    assert jnp.allclose(out2, ref, atol=5e-3)

    print("KERNEL_OK")
</pallas_src>

<mosaic_0001>
module attributes {stable_mosaic.version = 11 : i64} {
  func.func @_mlp_softmax_kernel(%arg0: i32, %arg1: memref<64x128xf32, #tpu.memory_space<vmem>>, %arg2: memref<128x16xf32, #tpu.memory_space<vmem>>, %arg3: memref<1x16xf32, #tpu.memory_space<vmem>>, %arg4: memref<16x32xf32, #tpu.memory_space<vmem>>, %arg5: memref<1x32xf32, #tpu.memory_space<vmem>>, %arg6: memref<32x2xf32, #tpu.memory_space<vmem>>, %arg7: memref<1x2xf32, #tpu.memory_space<vmem>>, %arg8: memref<64x2xf32, #tpu.memory_space<vmem>>) attributes {dimension_semantics = [#tpu.dimension_semantics<parallel>], iteration_bounds = array<i64: 4>, scalar_prefetch = 0 : i64, scratch_operands = 0 : i64, tpu.core_type = #tpu.core_type<tc>, window_params = [{transform_indices = @transform_0, window_bounds = array<i64: 64, 128>}, {pipeline_mode = #tpu.pipeline_mode<synchronous>, transform_indices = @transform_1, window_bounds = array<i64: 128, 16>}, {pipeline_mode = #tpu.pipeline_mode<synchronous>, transform_indices = @transform_2, window_bounds = array<i64: 1, 16>}, {pipeline_mode = #tpu.pipeline_mode<synchronous>, transform_indices = @transform_3, window_bounds = array<i64: 16, 32>}, {pipeline_mode = #tpu.pipeline_mode<synchronous>, transform_indices = @transform_4, window_bounds = array<i64: 1, 32>}, {pipeline_mode = #tpu.pipeline_mode<synchronous>, transform_indices = @transform_5, window_bounds = array<i64: 32, 2>}, {pipeline_mode = #tpu.pipeline_mode<synchronous>, transform_indices = @transform_6, window_bounds = array<i64: 1, 2>}, {transform_indices = @transform_7, window_bounds = array<i64: 64, 2>}]} {
    %c0 = arith.constant 0 : index
    %c0_0 = arith.constant 0 : index
    %0 = vector.load %arg1[%c0, %c0_0] : memref<64x128xf32, #tpu.memory_space<vmem>>, vector<64x128xf32>
    %c0_1 = arith.constant 0 : index
    %c0_2 = arith.constant 0 : index
    %1 = vector.load %arg2[%c0_1, %c0_2] : memref<128x16xf32, #tpu.memory_space<vmem>>, vector<128x16xf32>
    %cst = arith.constant dense<0.000000e+00> : vector<64x16xf32>
    %2 = tpu.matmul %0, %1, %cst {dimension_numbers = #tpu.dot_dimension_numbers<[1], [0], [0], [1], [0, 0, 1, 1], [], []>} : vector<64x128xf32>, vector<128x16xf32>, vector<64x16xf32> -> vector<64x16xf32>
    %c0_3 = arith.constant 0 : index
    %c0_4 = arith.constant 0 : index
    %3 = vector.load %arg3[%c0_3, %c0_4] : memref<1x16xf32, #tpu.memory_space<vmem>>, vector<1x16xf32>
    %4 = vector.broadcast %3 : vector<1x16xf32> to vector<64x16xf32>
    %5 = arith.addf %2, %4 : vector<64x16xf32>
    %cst_5 = arith.constant 0.000000e+00 : f32
    %6 = vector.broadcast %cst_5 : f32 to vector<64x16xf32>
    %7 = arith.maximumf %5, %6 : vector<64x16xf32>
    %c0_6 = arith.constant 0 : index
    %c0_7 = arith.constant 0 : index
    %8 = vector.load %arg4[%c0_6, %c0_7] : memref<16x32xf32, #tpu.memory_space<vmem>>, vector<16x32xf32>
    %cst_8 = arith.constant dense<0.000000e+00> : vector<64x32xf32>
    %9 = tpu.matmul %7, %8, %cst_8 {dimension_numbers = #tpu.dot_dimension_numbers<[1], [0], [0], [1], [0, 0, 1, 1], [], []>} : vector<64x16xf32>, vector<16x32xf32>, vector<64x32xf32> -> vector<64x32xf32>
    %c0_9 = arith.constant 0 : index
    %c0_10 = arith.constant 0 : index
    %10 = vector.load %arg5[%c0_9, %c0_10] : memref<1x32xf32, #tpu.memory_space<vmem>>, vector<1x32xf32>
    %11 = vector.broadcast %10 : vector<1x32xf32> to vector<64x32xf32>
    %12 = arith.addf %9, %11 : vector<64x32xf32>
    %cst_11 = arith.constant 0.000000e+00 : f32
    %13 = vector.broadcast %cst_11 : f32 to vector<64x32xf32>
    %14 = arith.maximumf %12, %13 : vector<64x32xf32>
    %c0_12 = arith.constant 0 : index
    %c0_13 = arith.constant 0 : index
    %15 = vector.load %arg6[%c0_12, %c0_13] : memref<32x2xf32, #tpu.memory_space<vmem>>, vector<32x2xf32>
    %cst_14 = arith.constant dense<0.000000e+00> : vector<64x2xf32>
    %16 = tpu.matmul %14, %15, %cst_14 {dimension_numbers = #tpu.dot_dimension_numbers<[1], [0], [0], [1], [0, 0, 1, 1], [], []>} : vector<64x32xf32>, vector<32x2xf32>, vector<64x2xf32> -> vector<64x2xf32>
    %c0_15 = arith.constant 0 : index
    %c0_16 = arith.constant 0 : index
    %17 = vector.load %arg7[%c0_15, %c0_16] : memref<1x2xf32, #tpu.memory_space<vmem>>, vector<1x2xf32>
    %18 = vector.broadcast %17 : vector<1x2xf32> to vector<64x2xf32>
    %19 = arith.addf %16, %18 : vector<64x2xf32>
    %20 = vector.extract_strided_slice %19 {offsets = [0, 1], sizes = [64, 1], strides = [1, 1]} : vector<64x2xf32> to vector<64x1xf32>
    %21 = vector.extract_strided_slice %19 {offsets = [0, 0], sizes = [64, 1], strides = [1, 1]} : vector<64x2xf32> to vector<64x1xf32>
    %22 = arith.subf %20, %21 : vector<64x1xf32>
    %cst_17 = arith.constant 0.000000e+00 : f32
    %23 = vector.broadcast %cst_17 : f32 to vector<64x1xf32>
    %24 = arith.subf %23, %22 : vector<64x1xf32>
    %25 = math.exp %24 : vector<64x1xf32>
    %cst_18 = arith.constant 1.000000e+00 : f32
    %26 = vector.broadcast %cst_18 : f32 to vector<64x1xf32>
    %27 = arith.addf %26, %25 : vector<64x1xf32>
    %28 = tpu.reciprocal %27 {approx = true} : vector<64x1xf32> -> vector<64x1xf32>
    %cst_19 = arith.constant 1.000000e+00 : f32
    %29 = vector.broadcast %cst_19 : f32 to vector<64x1xf32>
    %30 = arith.subf %29, %28 : vector<64x1xf32>
    %31 = tpu.concatenate %30, %28 in 1 : vector<64x1xf32>, vector<64x1xf32> -> vector<64x2xf32>
    %c0_20 = arith.constant 0 : index
    %c0_21 = arith.constant 0 : index
    %32 = vector.load %arg8[%c0_20, %c0_21] : memref<64x2xf32, #tpu.memory_space<vmem>>, vector<64x2xf32>
    tpu.vector_store %arg8[%c0_20, %c0_21], %31 {strides = array<i32>} : memref<64x2xf32, #tpu.memory_space<vmem>>, vector<64x2xf32>,
    return
  }
  func.func @transform_0(%arg0: i32) -> (i32, i32) {
    %c0_i32 = arith.constant 0 : i32
    %c0_i32_0 = arith.constant 0 : i32
    return %arg0, %c0_i32 : i32, i32
  }
  func.func @transform_1(%arg0: i32) -> (i32, i32) {
    %c0_i32 = arith.constant 0 : i32
    %c0_i32_0 = arith.constant 0 : i32
    %c0_i32_1 = arith.constant 0 : i32
    return %c0_i32, %c0_i32_0 : i32, i32
  }
  func.func @transform_2(%arg0: i32) -> (i32, i32) {
    %c0_i32 = arith.constant 0 : i32
    %c0_i32_0 = arith.constant 0 : i32
    %c0_i32_1 = arith.constant 0 : i32
    return %c0_i32, %c0_i32_0 : i32, i32
  }
  func.func @transform_3(%arg0: i32) -> (i32, i32) {
    %c0_i32 = arith.constant 0 : i32
    %c0_i32_0 = arith.constant 0 : i32
    %c0_i32_1 = arith.constant 0 : i32
    return %c0_i32, %c0_i32_0 : i32, i32
  }
  func.func @transform_4(%arg0: i32) -> (i32, i32) {
    %c0_i32 = arith.constant 0 : i32
    %c0_i32_0 = arith.constant 0 : i32
    %c0_i32_1 = arith.constant 0 : i32
    return %c0_i32, %c0_i32_0 : i32, i32
  }
  func.func @transform_5(%arg0: i32) -> (i32, i32) {
    %c0_i32 = arith.constant 0 : i32
    %c0_i32_0 = arith.constant 0 : i32
    %c0_i32_1 = arith.constant 0 : i32
    return %c0_i32, %c0_i32_0 : i32, i32
  }
  func.func @transform_6(%arg0: i32) -> (i32, i32) {
    %c0_i32 = arith.constant 0 : i32
    %c0_i32_0 = arith.constant 0 : i32
    %c0_i32_1 = arith.constant 0 : i32
    return %c0_i32, %c0_i32_0 : i32, i32
  }
  func.func @transform_7(%arg0: i32) -> (i32, i32) {
    %c0_i32 = arith.constant 0 : i32
    %c0_i32_0 = arith.constant 0 : i32
    return %arg0, %c0_i32 : i32, i32
  }
}

</mosaic_0001>

<bundles_post_ra>
// kernel: tpu_custom_call.1
= control target key start
LH: loop header
LB: loop body
LE: loop exit
PB: predicated region body
PF: predicated region fallthrough
CT: control target
= control target key end

     0   :  { %12 = vsyncpa [#allocation3], 0  ;;  %s1905_s0 = inlined_call_operand.hbm [shape: f32[200,128], index: 0, kind: input, shape index: {}]   ;;  %s1906_s1 = inlined_call_operand.vmem [shape: f32[128,16], index: 1, kind: input, shape index: {}]   ;;  %s1907_s2 = inlined_call_operand.vmem [shape: f32[1,16], index: 2, kind: input, shape index: {}]   ;;  %s1908_s3 = inlined_call_operand.vmem [shape: f32[16,32], index: 3, kind: input, shape index: {}]   ;;  %s1909_s4 = inlined_call_operand.vmem [shape: f32[1,32], index: 4, kind: input, shape index: {}]   ;;  %s1910_s5 = inlined_call_operand.vmem [shape: f32[32,2], index: 5, kind: input, shape index: {}]   ;;  %s1911_s6 = inlined_call_operand.vmem [shape: f32[1,2], index: 6, kind: input, shape index: {}]   ;;  %s1912_s7 = inlined_call_operand.vmem [shape: f32[200,2], index: 7, kind: output, shape index: {}]  }
   0x1   :  { %14 = vsyncpa [#allocation3 + $0x1], 0  ;;  %s1617_s24 = smov 0   ;;  %s1619_s25 = smov 0  }
   0x2   :  { %s1621_s26 = smov 0   ;;  %s1623_s27 = smov 0  }
   0x3 LB: > { %s1636_s28 = sadd.s32 4294967295, %s1538_s27   ;;  %s1639_s29 = sadd.s32 1, %s1538_s27   ;;  %s1538_s27 = sphi %s1623_s27, %s1921_s27   ;;  %s1534_s26 = sphi %s1621_s26, %s1920_s26   ;;  %s1530_s25 = sphi %s1619_s25, %s1919_s25   ;;  %s1526_s24 = sphi %s1617_s24, %s1918_s24  }
   0x4   : > { %s24_s30 = ssub.s32 %s1538_s27, %s1639_s29  ;;  %s27_s8 = sadd.s32 1, %s1534_s26 }
   0x5   : > { %p25_p0 = scmp.eq.s32.totalorder %s24_s30, 0  ;;  %p34_p1 = scmp.ne.s32.totalorder %s1534_s26, %s1530_s25 }
   0x6   : > { %p35_p2 = scmp.eq.s32.totalorder %s1538_s27, 0  ;;  %p40_p3 = scmp.ne.s32.totalorder %s1530_s25, %s1526_s24 }
   0x7   : > { %s1649_s9 = scalar_select %p25_p0, %s1534_s26, %s27_s8  }
   0x8   : > { %p36_p4 = por %p35_p2, %p34_p1  ;;  %p41_p5 = scmp.eq.s32.totalorder %s1636_s28, 0 }
   0x9   : > { %p190_p6 = scmp.eq.s32.totalorder %s1636_s28, 3  ;;  %p1136_p9 = scmp.ge.s32.totalorder %s1538_s27, 4 }
   0xa   : > { %p1653_p7 = por %p41_p5, %p40_p3 }
   0xb   : > { %p1657_p8 = por %p190_p6, %p34_p1  ;;  %230 = sbr.rel (%p1136_p9) target bundleno = 48 (0x30), region = 40 }
  0x10   : > { %233 = sbr.rel (!%p36_p4) target bundleno = 48 (0x30), region = 44  ;;  %s234_s12 = sand.u32 (%p36_p4), 1, %s1534_s26  }
  0x11   : > { %s1138_s13 = sshll.u32 (%p36_p4), %s1538_s27, 3  ;;  %s1137_s14 = sshll.u32 (%p36_p4), %s234_s12, 6 }
  0x12   : > { %s240_s15 = ssub.s32 (%p36_p4), 25, %s1138_s13  ;;  %s1667_s18 = scalar_lea.sflag (%p36_p4), [#allocation3], %s234_s12 }
  0x13   : > { %p241_p10 = scmp.lt.s32.totalorder (%p36_p4), %s240_s15, 8  ;;  %s238_s19 = scalar_lea.vmem (%p36_p4), [#allocation2], %s1137_s14 }
  0x15   : > { %s1923_s15 = smov (!%p241_p10, %s240_s15), 8 }
  0x16   : > { %s1664_s16 = sshll.u32 %s1923_s15, 7 }
  0x17   : > { %s245_s17 = ssub.s32 1024, %s1664_s16 }
  0x18   : > { %246 = vsyncadd %s1667_s18, %s245_s17  ;;  %p1140_p11 = scmp.ne.s32.totalorder %s1664_s16, 0  ;;  %s1183_s20 = sshll.u32 %s1538_s27, 10 }
  0x19   : > { %s1675_s23 = scalar_lea.hbm %s1905_s0, %s1183_s20  ;;  %s251_s24 = sshll.u32 %s238_s19, 4  ;;  %s1677_s24 = int_to_ptr.vmem [resolvable:$true] %s251_s24 }
  0x1a   : > { %s1446_s30 = scalar_lea.hbm %s1675_s23, %s1664_s16  ;;  %s1450_s13 = scalar_lea.hbm %s1905_s0, 3200 }
  0x1b   : > { %p1447_p12 = scmp.ne.s32.totalorder %s1675_s23, %s1446_s30  ;;  %p1451_p1 = scmp.lt.s32.totalorder %s1675_s23, %s1905_s0 }
  0x1c   : > { %p1452_p2 = scmp.lt.s32.totalorder %s1450_s13, %s1446_s30 }
  0x1d   : > { %p1448_p13 = pnand %p1447_p12, %p1140_p11 }
  0x1e   : > { %p1453_p3 = por %p1452_p2, %p1451_p1 }
  0x1f   : > { %p1449_p0 = pneg %p1448_p13 }
  0x21   : > { %p1454_p4 = pnand %p1453_p3, %p1449_p0 }
  0x23   : > { %1457 = shalt.err (!%p1454_p4)
}
  0x24   : > { %s1458_s17 = scalar_lea.vmem %s1677_s24, %s1664_s16  ;;  %s1572_s19 = smov [#allocation2]  }
  0x25   : > { %p1459_p5 = scmp.ne.s32.totalorder %s1677_s24, %s1458_s17  ;;  %s1462_s20 = sshll.u32 %s1572_s19, 4  ;;  %s1463_s20 = int_to_ptr.vmem [resolvable:$false] %s1462_s20 }
  0x26   : > { %s1464_s21 = scalar_lea.vmem %s1463_s20, 2048  ;;  %p1465_p10 = scmp.lt.s32.totalorder %s1677_s24, %s1463_s20 }
  0x27   : > { %p1460_p6 = pnand %p1459_p5, %p1140_p11  ;;  %p1466_p12 = scmp.lt.s32.totalorder %s1464_s21, %s1458_s17 }
  0x29   : > { %p1461_p9 = pneg %p1460_p6  ;;  %p1467_p13 = por %p1466_p12, %p1465_p10 }
  0x2b   : > { %p1468_p1 = pnand %p1467_p13, %p1461_p9 }
  0x2d   : > { %1471 = shalt.err (!%p1468_p1)
}
  0x2e   : > { %s1573_s22 = smov 128   ;;  %s1574_s30 = smov 8  }
  0x2f   : > { %257 = dma.hbm_to_vmem [thread:$0]  (%p1140_p11), %s1675_s23, %s1664_s16, %s1677_s24, %s1667_s18, %s1573_s22, %s1573_s22, %s1574_s30  }
  0x30 PF: > { %p1144_p0 = scmp.ge.s32.totalorder %s1538_s27, 1  ;;  %p259_p2 = scmp.lt.s32.totalorder %s1538_s27, 5 }
  0x32   : > { %p260_p3 = pnand %p1144_p0, %p259_p2 }
  0x33   : > { %s265_s8 = sand.u32 (!%p260_p3), 1, %s1530_s25  }
  0x34   : > { %263 = sbr.rel (%p260_p3) target bundleno = 1012 (0x3f4), region = 48  ;;  %s1706_s12 = sshll.u32 (!%p260_p3), %s265_s8, 6 }
  0x35   : > { %s266_s13 = scalar_lea.sflag (!%p260_p3), [#allocation3], %s265_s8  ;;  %s1709_s14 = scalar_lea.vmem (!%p260_p3), [#allocation2], %s1706_s12 }
  0x39   : > { %1521 = dma.done.wait (%p1653_p7), %s266_s13, 1024  }
  0x3a   : > { %1523 = vsyncadd (%p1653_p7), %s266_s13, 4294966272  ;;  %v332_v0 = vld [vmem:[%s1906_s1 + $0x78] sm:$0xff]  ;;  %v331_v1 = vld [vmem:[%s1906_s1 + $0x70] sm:$0xff]  ;;  %vm462_vm0 = vcmask 130048   ;;  %vm611_vm1 = vcmask 261120   ;;  %s1575_s24 = smov 1  }
  0x3b   : > { %1233 = vmatprep.subr.mxu0 %v332_v0  ;;  %v330_v2 = vld [vmem:[%s1906_s1 + $0x68] sm:$0xff]  ;;  %v329_v3 = vld [vmem:[%s1906_s1 + $0x60] sm:$0xff]  ;;  %v328_v5 = vld [vmem:[%s1906_s1 + $0x58] sm:$0xff]  ;;  %s1576_s15 = smov 127   ;;  %vm861_vm2 = vcmask 7168   ;;  %vm870_vm3 = vcmask 15360  }
  0x3c   : > { %1234 = vmatpush3.msra.mxu0 %v332_v0  ;;  %v309_v4 = vld [vmem:[%s1709_s14] sm:$0xff]  ;;  %v327_v6 = vld [vmem:[%s1906_s1 + $0x50] sm:$0xff]  ;;  %v326_v7 = vld [vmem:[%s1906_s1 + $0x48] sm:$0xff]  ;;  %s1816_s17 = scalar_lea.vmem [#allocation4], %s1706_s12   ;;  %s1167_s12 = sshll.u32 (%p1657_p8), %s1636_s28, 3 }
  0x3d   : > { %1235 = vmatprep.subr.mxu0 %v331_v1  ;;  %1265 = vmatprep.mubr.f32.mxu0 %v309_v4  ;;  %v325_v8 = vld [vmem:[%s1906_s1 + $0x40] sm:$0xff]  ;;  %v324_v9 = vld [vmem:[%s1906_s1 + $0x38] sm:$0xff]  ;;  %v323_v10 = vld [vmem:[%s1906_s1 + $0x30] sm:$0xff]  ;;  %s1184_s10 = sshll.u32 (%p1657_p8), %s1636_s28, 6  ;;  %s887_s19 = ssub.s32 (%p1657_p8), 25, %s1167_s12 }
  0x3e   : > { %1236 = vmatpush3.msra.mxu0 %v331_v1  ;;  %v322_v11 = vld [vmem:[%s1906_s1 + $0x28] sm:$0xff]  ;;  %v321_v12 = vld [vmem:[%s1906_s1 + $0x20] sm:$0xff]  ;;  %v320_v13 = vld [vmem:[%s1906_s1 + $0x18] sm:$0xff]  ;;  %s1848_s21 = scalar_lea.vmem (%p1657_p8), %s1912_s7, %s1184_s10   ;;  %p888_p7 = scmp.lt.s32.totalorder (%p1657_p8), %s887_s19, 8 }
  0x3f   : > { %1237 = vmatprep.subr.mxu0 %v330_v2  ;;  %v319_v14 = vld [vmem:[%s1906_s1 + $0x10] sm:$0xff]  ;;  %v318_v15 = vld [vmem:[%s1906_s1 + $0x8] sm:$0xff]  ;;  %v317_v16 = vld [vmem:[%s1906_s1] sm:$0xff] }
  0x40   : > { %1238 = vmatpush3.msra.mxu0 %v330_v2  ;;  %v310_v17 = vld [vmem:[%s1709_s14 + $0x8] sm:$0xff]  ;;  %v311_v18 = vld [vmem:[%s1709_s14 + $0x10] sm:$0xff]  ;;  %v312_v19 = vld [vmem:[%s1709_s14 + $0x18] sm:$0xff] }
  0x41   : > { %1239 = vmatprep.subr.mxu0 %v329_v3  ;;  %v313_v20 = vld [vmem:[%s1709_s14 + $0x20] sm:$0xff]  ;;  %v314_v21 = vld [vmem:[%s1709_s14 + $0x28] sm:$0xff]  ;;  %v315_v22 = vld [vmem:[%s1709_s14 + $0x30] sm:$0xff] }
  0x42   : > { %1240 = vmatpush3.msra.mxu0 %v329_v3  ;;  %v316_v23 = vld [vmem:[%s1709_s14 + $0x38] sm:$0xff]  ;;  %v454_v24 = vld [vmem:[%s1908_s3 + $0x8] sm:$0xff]  ;;  %v453_v25 = vld [vmem:[%s1908_s3] sm:$0xff] }
  0x43   : > { %1241 = vmatprep.subr.mxu0 %v328_v5  ;;  %1277 = vmatprep.subr.mxu1 %v454_v24  ;;  %v603_v26 = vld [vmem:[%s1910_s5 + $0x18] sm:$0xff]  ;;  %v1147_v27 = vld [vmem:[%s1907_s2] ss:$0 sm:$0xff]  ;;  %v602_v38 = vld [vmem:[%s1910_s5 + $0x10] sm:$0xff] }
  0x44   : > { %1242 = vmatpush3.msra.mxu0 %v328_v5  ;;  %1278 = vmatpush3.msra.mxu1 %v454_v24  ;;  %v601_v42 = vld [vmem:[%s1910_s5 + $0x8] sm:$0xff]  ;;  %v600_v54 = vld [vmem:[%s1910_s5] sm:$0xff] }
  0x45   : > { %1243 = vmatprep.subr.mxu0 %v327_v6  ;;  %1279 = vmatprep.subr.mxu1 %v453_v25  ;;  %v1148_v55 = vld [vmem:[%s1909_s4] ss:$0 sm:$0xff] }
  0x46   : > { %1244 = vmatpush3.msra.mxu0 %v327_v6  ;;  %1280 = vmatpush3.msra.mxu1 %v453_v25 }
  0x47   : > { %1245 = vmatprep.subr.mxu0 %v326_v7  ;;  %1293 = vmatprep.subr.mxu1 %v603_v26 }
  0x48   : > { %1246 = vmatpush3.msra.mxu0 %v326_v7 }
  0x49   : > { %1247 = vmatprep.subr.mxu0 %v325_v8 }
  0x4a   : > { %1248 = vmatpush3.msra.mxu0 %v325_v8 }
  0x4b   : > { %1249 = vmatprep.subr.mxu0 %v324_v9 }
  0x4c   : > { %1250 = vmatpush3.msra.mxu0 %v324_v9 }
  0x4d   : > { %1251 = vmatprep.subr.mxu0 %v323_v10 }
  0x4e   : > { %1252 = vmatpush3.msra.mxu0 %v323_v10 }
  0x4f   : > { %1253 = vmatprep.subr.mxu0 %v322_v11 }
  0x50   : > { %1254 = vmatpush3.msra.mxu0 %v322_v11 }
  0x51   : > { %1255 = vmatprep.subr.mxu0 %v321_v12 }
  0x52   : > { %1256 = vmatpush3.msra.mxu0 %v321_v12 }
  0x53   : > { %1257 = vmatprep.subr.mxu0 %v320_v13 }
  0x54   : > { %1258 = vmatpush3.msra.mxu0 %v320_v13 }
  0x55   : > { %1259 = vmatprep.subr.mxu0 %v319_v14 }
  0x56   : > { %1260 = vmatpush3.msra.mxu0 %v319_v14 }
  0x57   : > { %1261 = vmatprep.subr.mxu0 %v318_v15 }
  0x58   : > { %1262 = vmatpush3.msra.mxu0 %v318_v15 }
  0x59   : > { %1263 = vmatprep.subr.mxu0 %v317_v16 }
  0x5a   : > { %1264 = vmatpush3.msra.mxu0 %v317_v16  ;;  %v1157_v16 = vld [vmem:[%s1911_s6] ss:$0 sm:$0xff] }
  0x5b   : > { %1266 = vmatmul.mubr.f32.vlgmr.msra.gmra.mxu0 %v310_v17 }
  0x5c   : > { %1268 = vmatprep.mubr.f32.mxu0 %v311_v18 }
  0x5f   : > { %1269 = vmatmul.mubr.f32.gmra.mxu0 %v312_v19 }
  0x60   : > { %1271 = vmatprep.mubr.f32.mxu0 %v313_v20 }
  0x63   : > { %1272 = vmatmul.mubr.f32.gmra.mxu0 %v314_v21 }
  0x64   : > { %1274 = vmatprep.mubr.f32.mxu0 %v315_v22 }
  0x67   : > { %1275 = vmatmul.mubr.f32.gmra.mxu0 %v316_v23 }
 0x11b   : > { %v1267_v28 = vpop.f32.mrf.mxu0 }
 0x11c   : > { %v412_v29 = vadd.f32 %v1267_v28, %v1147_v27 }
 0x11d   : > { %v406_v30 = vpop.f32.mrf.mxu0 }
 0x11e   : > { %v407_v31 = vadd.f32 %v1147_v27, %v406_v30  ;;  %v446_v34 = vmax.f32 %v412_v29, 0.0 }
 0x11f   : > { %v1270_v32 = vpop.f32.mrf.mxu0 }
 0x120   : > { %v445_v33 = vmax.f32 %v407_v31, 0.0  ;;  %v422_v35 = vadd.f32 %v1270_v32, %v1147_v27 }
 0x121   : > { %v416_v36 = vpop.f32.mrf.mxu0 }
 0x122   : > { %v417_v37 = vadd.f32 %v1147_v27, %v416_v36  ;;  %1281 = vmatprep.mubr.msk.f32.mxu1 %vm462_vm0, %v445_v33  ;;  %v448_v43 = vmax.f32 %v422_v35, 0.0 }
 0x123   : > { %v1273_v39 = vpop.f32.mrf.mxu0  ;;  %1282 = vmatmul.mubr.msk.f32.vlgmr.msra.gmra.mxu1 %vm462_vm0, %v446_v34 }
 0x124   : > { %v447_v40 = vmax.f32 %v417_v37, 0.0  ;;  %v432_v41 = vadd.f32 %v1273_v39, %v1147_v27  ;;  %1294 = vmatpush3.msra.mxu1 %v603_v26 }
 0x125   : > { %v426_v44 = vpop.f32.mrf.mxu0  ;;  %1295 = vmatprep.subr.mxu1 %v602_v38 }
 0x126   : > { %v427_v45 = vadd.f32 %v1147_v27, %v426_v44  ;;  %1284 = vmatprep.mubr.msk.f32.mxu1 %vm462_vm0, %v447_v40  ;;  %1296 = vmatpush3.msra.mxu1 %v602_v38  ;;  %v450_v46 = vmax.f32 %v432_v41, 0.0 }
 0x127   : > { %v1276_v47 = vpop.f32.mrf.mxu0  ;;  %1285 = vmatmul.mubr.msk.f32.gmra.mxu1 %vm462_vm0, %v448_v43  ;;  %1297 = vmatprep.subr.mxu1 %v601_v42 }
 0x128   : > { %v449_v48 = vmax.f32 %v427_v45, 0.0  ;;  %v442_v49 = vadd.f32 %v1276_v47, %v1147_v27  ;;  %1298 = vmatpush3.msra.mxu1 %v601_v42 }
 0x129   : > { %v436_v50 = vpop.f32.mrf.mxu0  ;;  %1299 = vmatprep.subr.mxu1 %v600_v54 }
 0x12a   : > { %v437_v51 = vadd.f32 %v1147_v27, %v436_v50  ;;  %1287 = vmatprep.mubr.msk.f32.mxu1 %vm462_vm0, %v449_v48  ;;  %v452_v52 = vmax.f32 %v442_v49, 0.0  ;;  %1300 = vmatpush3.msra.mxu1 %v600_v54 }
 0x12b   : > { %1288 = vmatmul.mubr.msk.f32.gmra.mxu1 %vm462_vm0, %v450_v46 }
 0x12c   : > { %v451_v53 = vmax.f32 %v437_v51, 0.0 }
 0x12e   : > { %1290 = vmatprep.mubr.msk.f32.mxu1 %vm462_vm0, %v451_v53 }
 0x12f   : > { %1291 = vmatmul.mubr.msk.f32.gmra.mxu1 %vm462_vm0, %v452_v52 }
 0x1e3   : > { %v1283_v56 = vpop.f32.mrf.mxu1 }
 0x1e4   : > { %v559_v57 = vadd.f32 %v1283_v56, %v1148_v55 }
 0x1e5   : > { %v553_v58 = vpop.f32.mrf.mxu1 }
 0x1e6   : > { %v554_v59 = vadd.f32 %v1148_v55, %v553_v58  ;;  %v593_v62 = vmax.f32 %v559_v57, 0.0 }
 0x1e7   : > { %v1286_v60 = vpop.f32.mrf.mxu1 }
 0x1e8   : > { %v592_v61 = vmax.f32 %v554_v59, 0.0  ;;  %v569_v63 = vadd.f32 %v1286_v60, %v1148_v55 }
 0x1e9   : > { %v563_v0 = vpop.f32.mrf.mxu1 }
 0x1ea   : > { %v564_v1 = vadd.f32 %v1148_v55, %v563_v0  ;;  %1301 = vmatprep.mubr.msk.f32.mxu1 %vm611_vm1, %v592_v61  ;;  %v595_v4 = vmax.f32 %v569_v63, 0.0 }
 0x1eb   : > { %v1289_v2 = vpop.f32.mrf.mxu1  ;;  %1302 = vmatmul.mubr.msk.f32.vlgmr.msra.gmra.mxu1 %vm611_vm1, %v593_v62 }
 0x1ec   : > { %v594_v3 = vmax.f32 %v564_v1, 0.0  ;;  %v579_v5 = vadd.f32 %v1289_v2, %v1148_v55 }
 0x1ed   : > { %v573_v6 = vpop.f32.mrf.mxu1 }
 0x1ee   : > { %v574_v7 = vadd.f32 %v1148_v55, %v573_v6  ;;  %1304 = vmatprep.mubr.msk.f32.mxu1 %vm611_vm1, %v594_v3  ;;  %v597_v10 = vmax.f32 %v579_v5, 0.0 }
 0x1ef   : > { %v1292_v8 = vpop.f32.mrf.mxu1  ;;  %1305 = vmatmul.mubr.msk.f32.gmra.mxu1 %vm611_vm1, %v595_v4 }
 0x1f0   : > { %v596_v9 = vmax.f32 %v574_v7, 0.0  ;;  %v589_v11 = vadd.f32 %v1292_v8, %v1148_v55 }
 0x1f1   : > { %v583_v12 = vpop.f32.mrf.mxu1 }
 0x1f2   : > { %v584_v13 = vadd.f32 %v1148_v55, %v583_v12  ;;  %1307 = vmatprep.mubr.msk.f32.mxu1 %vm611_vm1, %v596_v9  ;;  %v599_v15 = vmax.f32 %v589_v11, 0.0 }
 0x1f3   : > { %1308 = vmatmul.mubr.msk.f32.gmra.mxu1 %vm611_vm1, %v597_v10 }
 0x1f4   : > { %v598_v14 = vmax.f32 %v584_v13, 0.0 }
 0x1f6   : > { %1310 = vmatprep.mubr.msk.f32.mxu1 %vm611_vm1, %v598_v14 }
 0x1f7   : > { %1311 = vmatmul.mubr.msk.f32.gmra.mxu1 %vm611_vm1, %v599_v15 }
 0x2ab   : > { %v1303_v17 = vpop.f32.mrf.mxu1 }
 0x2ac   : > { %v708_v18 = vadd.f32 %v1303_v17, %v1157_v16 }
 0x2ad   : > { %v702_v19 = vpop.f32.mrf.mxu1 }
 0x2ae   : > { %751 = vrot.lane.b32.xlu0 %v708_v18, %s1575_s24  ;;  %v703_v21 = vadd.f32 %v1157_v16, %v702_v19 }
 0x2af   : > { %v1306_v20 = vpop.f32.mrf.mxu1 }
 0x2b0   : > { %v718_v22 = vadd.f32 %v1306_v20, %v1157_v16 }
 0x2b1   : > { %v712_v23 = vpop.f32.mrf.mxu1 }
 0x2b2   : > { %755 = vrot.lane.b32.xlu1 %v718_v22, %s1575_s24  ;;  %749 = vrot.lane.b32.xlu0 %v703_v21, %s1575_s24  ;;  %v713_v25 = vadd.f32 %v1157_v16, %v712_v23 }
 0x2b3   : > { %v1309_v24 = vpop.f32.mrf.mxu1 }
 0x2b4   : > { %v728_v29 = vadd.f32 %v1309_v24, %v1157_v16 }
 0x2b5   : > { %v722_v26 = vpop.f32.mrf.mxu1 }
 0x2b6   : > { %v723_v27 = vadd.f32 %v1157_v16, %v722_v26  ;;  %753 = vrot.lane.b32.xlu1 %v713_v25, %s1575_s24 }
 0x2b7   : > { %v1312_v28 = vpop.f32.mrf.mxu1 }
 0x2b8   : > { %757 = vrot.lane.b32.xlu0 %v723_v27, %s1575_s24  ;;  %v738_v32 = vadd.f32 %v1312_v28, %v1157_v16 }
 0x2b9   : > { %v732_v30 = vpop.f32.mrf.mxu1 }
 0x2ba   : > { %v733_v31 = vadd.f32 %v1157_v16, %v732_v30  ;;  %759 = vrot.lane.b32.xlu1 %v728_v29, %s1575_s24 }
 0x2bc   : > { %761 = vrot.lane.b32.xlu0 %v733_v31, %s1575_s24 }
 0x2be   : > { %763 = vrot.lane.b32.xlu1 %v738_v32, %s1575_s24 }
 0x320   : > { %v752_v33 = vpop.permute.xlu0 %751 }
 0x321   : > { %v774_v34 = vsub.f32 %v708_v18, %v752_v33 }
 0x323   : > { %v782_v35 = vsub.f32 0.0, %v774_v34 }
 0x324   : > { %v756_v36 = vpop.permute.xlu1 %755  ;;  %v750_v37 = vpop.permute.xlu0 %749 }
 0x325   : > { %v791_v38 = vmul.f32 1.442695, %v782_v35  ;;  %v776_v39 = vsub.f32 %v718_v22, %v756_v36  ;;  %v773_v40 = vsub.f32 %v703_v21, %v750_v37 }
 0x327   : > { %1414 = vpow2.f32 %v791_v38  ;;  %v784_v41 = vsub.f32 0.0, %v776_v39  ;;  %v781_v42 = vsub.f32 0.0, %v773_v40 }
 0x328   : > { %v754_v43 = vpop.permute.xlu1 %753 }
 0x329   : > { %v795_v44 = vmul.f32 1.442695, %v784_v41  ;;  %v789_v45 = vmul.f32 1.442695, %v781_v42  ;;  %v775_v46 = vsub.f32 %v713_v25, %v754_v43 }
 0x32a   : > { %v758_v47 = vpop.permute.xlu0 %757 }
 0x32b   : > { %1416 = vpow2.f32 %v795_v44  ;;  %v783_v48 = vsub.f32 0.0, %v775_v46  ;;  %v777_v49 = vsub.f32 %v723_v27, %v758_v47 }
 0x32c   : > { %1418 = vpow2.f32 %v789_v45  ;;  %v760_v50 = vpop.permute.xlu1 %759 }
 0x32d   : > { %v793_v51 = vmul.f32 1.442695, %v783_v48  ;;  %v785_v52 = vsub.f32 0.0, %v777_v49  ;;  %v778_v53 = vsub.f32 %v728_v29, %v760_v50 }
 0x32e   : > { %v762_v54 = vpop.permute.xlu0 %761 }
 0x32f   : > { %1420 = vpow2.f32 %v793_v51  ;;  %v797_v55 = vmul.f32 1.442695, %v785_v52  ;;  %v786_v56 = vsub.f32 0.0, %v778_v53  ;;  %v779_v57 = vsub.f32 %v733_v31, %v762_v54 }
 0x330   : > { %v764_v58 = vpop.permute.xlu1 %763 }
 0x331   : > { %1422 = vpow2.f32 %v797_v55  ;;  %v799_v59 = vmul.f32 1.442695, %v786_v56  ;;  %v787_v60 = vsub.f32 0.0, %v779_v57  ;;  %v780_v61 = vsub.f32 %v738_v32, %v764_v58 }
 0x333   : > { %1424 = vpow2.f32 %v799_v59  ;;  %v801_v62 = vmul.f32 1.442695, %v787_v60  ;;  %v788_v63 = vsub.f32 0.0, %v780_v61 }
 0x334   : > { %v1415_v0 = vpop.eup %1414 }
 0x335   : > { %v806_v1 = vadd.f32 1.0, %v1415_v0  ;;  %1426 = vpow2.f32 %v801_v62  ;;  %v803_v2 = vmul.f32 1.442695, %v788_v63 }
 0x337   : > { %1428 = vrcp.f32 %v806_v1 }
 0x338   : > { %v1417_v3 = vpop.eup %1416  ;;  %1430 = vpow2.f32 %v803_v2 }
 0x339   : > { %v1419_v4 = vpop.eup %1418  ;;  %v808_v5 = vadd.f32 1.0, %v1417_v3 }
 0x33a   : > { %v805_v6 = vadd.f32 1.0, %v1419_v4 }
 0x33b   : > { %1432 = vrcp.f32 %v808_v5 }
 0x33c   : > { %v1421_v7 = vpop.eup %1420  ;;  %1434 = vrcp.f32 %v805_v6 }
 0x33d   : > { %v807_v8 = vadd.f32 1.0, %v1421_v7 }
 0x33e   : > { %v1423_v9 = vpop.eup %1422 }
 0x33f   : > { %1436 = vrcp.f32 %v807_v8  ;;  %v809_v10 = vadd.f32 1.0, %v1423_v9 }
 0x340   : > { %v1425_v11 = vpop.eup %1424 }
 0x341   : > { %v810_v12 = vadd.f32 1.0, %v1425_v11  ;;  %1438 = vrcp.f32 %v809_v10 }
 0x342   : > { %v1427_v13 = vpop.eup %1426 }
 0x343   : > { %1440 = vrcp.f32 %v810_v12  ;;  %v811_v14 = vadd.f32 1.0, %v1427_v13 }
 0x344   : > { %v1429_v15 = vpop.eup %1428 }
 0x345   : > { %v1431_v16 = vpop.eup %1430  ;;  %v822_v17 = vsub.f32 1.0, %v1429_v15  ;;  %1442 = vrcp.f32 %v811_v14 }
 0x346   : > { %v812_v18 = vadd.f32 1.0, %v1431_v16 }
 0x347   : > { %839 = vrot.lane.b32.xlu1 %v822_v17, %s1576_s15 }
 0x348   : > { %v1433_v19 = vpop.eup %1432  ;;  %1444 = vrcp.f32 %v812_v18 }
 0x349   : > { %v1435_v20 = vpop.eup %1434  ;;  %v824_v21 = vsub.f32 1.0, %v1433_v19 }
 0x34a   : > { %v821_v22 = vsub.f32 1.0, %v1435_v20 }
 0x34b   : > { %843 = vrot.lane.b32.xlu1 %v824_v21, %s1576_s15 }
 0x34c   : > { %v1437_v23 = vpop.eup %1436  ;;  %837 = vrot.lane.b32.xlu0 %v821_v22, %s1576_s15 }
 0x34d   : > { %v823_v24 = vsub.f32 1.0, %v1437_v23 }
 0x34e   : > { %v1439_v25 = vpop.eup %1438 }
 0x34f   : > { %v825_v28 = vsub.f32 1.0, %v1439_v25 }
 0x350   : > { %v1441_v26 = vpop.eup %1440  ;;  %841 = vrot.lane.b32.xlu0 %v823_v24, %s1576_s15 }
 0x351   : > { %v826_v27 = vsub.f32 1.0, %v1441_v26 }
 0x352   : > { %v1443_v29 = vpop.eup %1442 }
 0x353   : > { %847 = vrot.lane.b32.xlu1 %v826_v27, %s1576_s15  ;;  %v827_v32 = vsub.f32 1.0, %v1443_v29 }
 0x354   : > { %845 = vrot.lane.b32.xlu0 %v825_v28, %s1576_s15 }
 0x355   : > { %v1445_v30 = vpop.eup %1444 }
 0x356   : > { %v828_v31 = vsub.f32 1.0, %v1445_v30 }
 0x358   : > { %851 = vrot.lane.b32.xlu1 %v828_v31, %s1576_s15  ;;  %849 = vrot.lane.b32.xlu0 %v827_v32, %s1576_s15 }
 0x3b9   : > { %v840_v33 = vpop.permute.xlu1 %839 }
 0x3ba   : > { %v863_v34 = vsel %vm861_vm2, %v840_v33, %v1429_v15 }
 0x3bb   : > { %872 = vst.msk [vmem:[%s1816_s17 + $0x8] sm:$0xff] %vm870_vm3, %v863_v34 }
 0x3bd   : > { %v844_v35 = vpop.permute.xlu1 %843 }
 0x3be   : > { %v865_v36 = vsel %vm861_vm2, %v844_v35, %v1433_v19  ;;  %v838_v37 = vpop.permute.xlu0 %837 }
 0x3bf   : > { %874 = vst.msk [vmem:[%s1816_s17 + $0x18] sm:$0xff] %vm870_vm3, %v865_v36  ;;  %v862_v38 = vsel %vm861_vm2, %v838_v37, %v1435_v20 }
 0x3c0   : > { %871 = vst.msk [vmem:[%s1816_s17] sm:$0xff] %vm870_vm3, %v862_v38 }
 0x3c2   : > { %v842_v39 = vpop.permute.xlu0 %841 }
 0x3c3   : > { %v864_v40 = vsel %vm861_vm2, %v842_v39, %v1437_v23 }
 0x3c4   : > { %873 = vst.msk [vmem:[%s1816_s17 + $0x10] sm:$0xff] %vm870_vm3, %v864_v40 }
 0x3c5   : > { %v848_v41 = vpop.permute.xlu1 %847 }
 0x3c6   : > { %v867_v42 = vsel %vm861_vm2, %v848_v41, %v1441_v26  ;;  %v846_v43 = vpop.permute.xlu0 %845 }
 0x3c7   : > { %876 = vst.msk [vmem:[%s1816_s17 + $0x28] sm:$0xff] %vm870_vm3, %v867_v42  ;;  %v866_v44 = vsel %vm861_vm2, %v846_v43, %v1439_v25 }
 0x3c8   : > { %875 = vst.msk [vmem:[%s1816_s17 + $0x20] sm:$0xff] %vm870_vm3, %v866_v44  ;;  %885 = sbr.rel (!%p1657_p8) target bundleno = 1012 (0x3f4), region = 56 }
 0x3ca   : > { %v852_v45 = vpop.permute.xlu1 %851  ;;  %v850_v46 = vpop.permute.xlu0 %849 }
 0x3cb   : > { %v869_v47 = vsel %vm861_vm2, %v852_v45, %v1445_v30  ;;  %v868_v48 = vsel %vm861_vm2, %v850_v46, %v1443_v29 }
 0x3cc   : > { %878 = vst.msk [vmem:[%s1816_s17 + $0x38] sm:$0xff] %vm870_vm3, %v869_v47  ;;  %877 = vst.msk [vmem:[%s1816_s17 + $0x30] sm:$0xff] %vm870_vm3, %v868_v48 }
 0x3cd   : > { %s1925_s19 = smov (!%p888_p7, %s887_s19), 8 }
 0x3ce   : > { %s1168_s22 = sshll.u32 %s1925_s19, 7 }
 0x3cf   : > { %p1171_p11 = scmp.eq.s32.totalorder %s1168_s22, 0 }
 0x3d0   : > { %s1854_s11 = sshrl.u32 (!%p1171_p11), %s1925_s19, 3 }
 0x3d1   : > { %896 = sbr.rel (%p1171_p11) target bundleno = 1012 (0x3f4), region = 60  ;;  %p1172_p8 = scmp.le.s32.totalorder (!%p1171_p11), %s1854_s11, 0 }
 0x3d6   : > { %1087 = sbr.rel (%p1172_p8) target bundleno = 995 (0x3e3), region = 142  ;;  %s1915_s28 = smov (!%p1172_p8), %s1848_s21 }
 0x3d7   : > { %s1916_s30 = smov (!%p1172_p8), %s1816_s17  ;;  %s1863_s8 = smov (!%p1172_p8), 0  }
 0x3d8   : > { %s1865_s13 = smov (!%p1172_p8), 0  }
 0x3db LB: >> { %v973_v49 = vld [vmem:[%s1546_s30] sm:$0xff]  ;;  %v975_v50 = vld [vmem:[%s1546_s30 + $0x8] sm:$0xff]  ;;  %v977_v51 = vld [vmem:[%s1546_s30 + $0x10] sm:$0xff]  ;;  %s989_s16 = sadd.s32 1, %s1550_s8  ;;  %s967_s13 = sadd.s32 1, %s1554_s13   ;;  %s1554_s13 = sphi %s1865_s13, %s967_s13   ;;  %s1550_s8 = sphi %s1863_s8, %s1917_s8   ;;  %s1546_s30 = sphi %s1916_s30, %s994_s30   ;;  %s1542_s28 = sphi %s1915_s28, %s995_s28  }
 0x3dc   : >> { %974 = vst [vmem:[%s1542_s28] sm:$0xff] %v973_v49  ;;  %976 = vst [vmem:[%s1542_s28 + $0x8] sm:$0xff] %v975_v50  ;;  %v979_v52 = vld [vmem:[%s1546_s30 + $0x18] sm:$0xff]  ;;  %v981_v53 = vld [vmem:[%s1546_s30 + $0x20] sm:$0xff]  ;;  %p990_p4 = scmp.ge.s32.totalorder %s989_s16, %s1854_s11  ;;  %p966_p5 = scmp.ge.s32.totalorder %s967_s13, %s1854_s11 }
 0x3dd   : >> { %978 = vst [vmem:[%s1542_s28 + $0x10] sm:$0xff] %v977_v51  ;;  %v983_v54 = vld [vmem:[%s1546_s30 + $0x28] sm:$0xff]  ;;  %980 = vst [vmem:[%s1542_s28 + $0x18] sm:$0xff] %v979_v52  ;;  %v985_v55 = vld [vmem:[%s1546_s30 + $0x30] sm:$0xff] }
 0x3de   : >> { %982 = vst [vmem:[%s1542_s28 + $0x20] sm:$0xff] %v981_v53  ;;  %984 = vst [vmem:[%s1542_s28 + $0x28] sm:$0xff] %v983_v54  ;;  %v987_v56 = vld [vmem:[%s1546_s30 + $0x38] sm:$0xff]  ;;  %s1927_s16 = smov (%p990_p4, %s989_s16), 0  ;;  %969 = sbr.rel (!%p966_p5) target bundleno = 987 (0x3db), region = 148 }
 0x3df   : >> { %986 = vst [vmem:[%s1542_s28 + $0x30] sm:$0xff] %v985_v55  ;;  %988 = vst [vmem:[%s1542_s28 + $0x38] sm:$0xff] %v987_v56  ;;  %s1173_s18 = sshll.u32 %s1927_s16, 6  ;;  %s1917_s8 = smov %s1927_s16 }
 0x3e0   : >> { %s994_s30 = scalar_lea.vmem %s1816_s17, %s1173_s18 [#allocation4]   ;;  %s995_s28 = scalar_lea.vmem %s1848_s21, %s1173_s18  }
 0x3e3 PF: > { %s1884_s27 = sand.u32 7, %s1925_s19   ;;  %s1185_s23 = sshll.u32 %s1854_s11, 6 }
 0x3e4   : > { %s1000_s24 = scalar_lea.vmem %s1816_s17, %s1185_s23 [#allocation4]   ;;  %s1002_s15 = scalar_lea.vmem %s1848_s21, %s1185_s23  }
 0x3e5   : > { %p1178_p6 = scmp.le.s32.totalorder %s1884_s27, 0 }
 0x3e6   : > { %s1556_s12 = smov (!%p1178_p6), %s1002_s15   ;;  %s1560_s10 = smov (!%p1178_p6), %s1000_s24  }
 0x3e7   : > { %1101 = sbr.rel (%p1178_p6) target bundleno = 1012 (0x3f4), region = 153  ;;  %s1564_s14 = smov (!%p1178_p6), 0  }
 0x3e8   : > { %s1568_s20 = smov (!%p1178_p6), 0  }
 0x3ec LB: >> { %v1012_v57 = vld [vmem:[%s1562_s10] sm:$0xff]  ;;  %s1014_s19 = sadd.s32 1, %s1566_s14  ;;  %s1006_s20 = sadd.s32 1, %s1570_s20   ;;  %s1570_s20 = sphi %s1568_s20, %s1006_s20   ;;  %s1566_s14 = sphi %s1564_s14, %s1565_s14   ;;  %s1562_s10 = sphi %s1560_s10, %s1019_s10   ;;  %s1558_s12 = sphi %s1556_s12, %s1020_s12  }
 0x3ed   : >> { %1013 = vst [vmem:[%s1558_s12] sm:$0xff] %v1012_v57  ;;  %p1015_p9 = scmp.ge.s32.totalorder %s1014_s19, %s1884_s27  ;;  %p1005_p10 = scmp.ge.s32.totalorder %s1006_s20, %s1884_s27 }
 0x3ef   : >> { %s1929_s19 = smov (%p1015_p9, %s1014_s19), 0  ;;  %1008 = sbr.rel (!%p1005_p10) target bundleno = 1004 (0x3ec), region = 159 }
 0x3f0   : >> { %s1179_s17 = sshll.u32 %s1929_s19, 3  ;;  %s1565_s14 = smov %s1929_s19  }
 0x3f1   : >> { %s1019_s10 = scalar_lea.vmem %s1000_s24, %s1179_s17 [#allocation4]   ;;  %s1020_s12 = scalar_lea.vmem %s1002_s15, %s1179_s17  }
 0x3f4 PF: > { %p17_p12 = scmp.ge.s32.totalorder %s1639_s29, 6   ;;  %s1918_s24 = smov %s1530_s25 }
 0x3f5   : > { %s1919_s25 = smov %s1534_s26  ;;  %s1920_s26 = smov %s1649_s9 }
 0x3f6   : > { %s1921_s27 = smov %s1639_s29  ;;  %19 = sbr.rel (!%p17_p12) target bundleno = 3 (0x3), region = 170 }
 0x3fb   :  { %1036 = vsyncpa [#allocation3], 1 }
 0x3fc   :  { %1038 = vsyncpa [#allocation3 + $0x1], 1 }

</bundles_post_ra>
